<compile_context>
chip_gen: v7x
topology: tpu7x:2x2x1
jax: 0.10.0
libtpu: 0.0.40
codegen_flags: <defaults>
</compile_context>

<pallas_src>
import jax
import jax.numpy as jnp
from jax.experimental import pallas as pl
from jax.experimental.pallas import tpu as pltpu

HIDDEN = 100        # logical hidden width (matches the PyTorch module)
HIDDEN_PAD = 128    # lane-aligned packed hidden width


def _fcmlp_kernel(x_ref, w1_ref, b1_ref, w2_ref, b2_ref, w3_ref, b3_ref,
                  w4_ref, b4_ref, o_ref):
    # bf16 MXU matmuls with f32 accumulation; bias-add + ReLU in f32.
    h = jnp.dot(x_ref[...].astype(jnp.bfloat16), w1_ref[...],
                preferred_element_type=jnp.float32) + b1_ref[...]
    h = jnp.maximum(h, 0.0)

    h = jnp.dot(h.astype(jnp.bfloat16), w2_ref[...],
                preferred_element_type=jnp.float32) + b2_ref[...]
    h = jnp.maximum(h, 0.0)

    h = jnp.dot(h.astype(jnp.bfloat16), w3_ref[...],
                preferred_element_type=jnp.float32) + b3_ref[...]
    h = jnp.maximum(h, 0.0)

    # Layer 4 already carries the folded (1,1) zero-pad -> full-width result,
    # single unmasked lane-dense store.
    y = jnp.dot(h.astype(jnp.bfloat16), w4_ref[...],
                preferred_element_type=jnp.float32) + b4_ref[...]
    o_ref[...] = y.astype(o_ref.dtype)


def _tile_footprint_bytes(tb, Nx):
    """Conservative per-step VMEM footprint estimate."""
    io = 4 * tb * Nx * 4                    # x + out tiles, f32, double-buffered
    act = 3 * tb * HIDDEN_PAD * 4           # live hidden activations (f32 + bf16 copies)
    wts = 4 * (2 * Nx * HIDDEN_PAD + 2 * HIDDEN_PAD * HIDDEN_PAD)  # bf16 weights, 2 bufs
    return io + act + wts


def _pick_batch_tile(B, Nx, vmem_budget=16 << 20):
    """Largest multiple-of-8 batch tile that (a) leaves >= 2 grid steps whenever the
    batch allows it (keeps both v7x TensorCores busy; no-op on v5e/v6e) and (b) fits a
    conservative VMEM budget (v7x: 64 MiB physical / 32 MiB default scoped)."""
    for tb in (4096, 2048, 1024, 512, 256, 128, 64, 32, 16, 8):
        if 2 * tb <= B and _tile_footprint_bytes(tb, Nx) <= vmem_budget:
            return tb
    # Tiny batch (B < 16): single grid step over the (padded) batch.
    tb = max(8, -(-B // 8) * 8)
    return tb if _tile_footprint_bytes(tb, Nx) <= vmem_budget else 8


def fcmlp_forward(x, packed, *, tb=None):
    """x: (B, Nx) float32. packed: dict of lane-aligned, pad-folded params
    (weights bf16, biases f32)."""
    B, Nx = x.shape
    if tb is None:
        tb = _pick_batch_tile(B, Nx)

    # Handle any batch size: pad B up to a multiple of the tile, slice afterwards.
    Bp = -(-B // tb) * tb
    if Bp != B:
        x = jnp.pad(x, ((0, Bp - B), (0, 0)))
    nb = Bp // tb

    w1, b1, w2, b2, w3, b3, w4, b4 = (
        packed["w1"], packed["b1"], packed["w2"], packed["b2"],
        packed["w3"], packed["b3"], packed["w4"], packed["b4"],
    )

    # Weights/biases: constant index_map -> VMEM-resident across batch tiles.
    resident = lambda arr: pl.BlockSpec(arr.shape, lambda i: (0, 0))

    # 4 matmuls per row: Nx->128, 128->128, 128->128, 128->Nx (pad folded in).
    flops = 2 * Bp * (Nx * HIDDEN_PAD + 2 * HIDDEN_PAD * HIDDEN_PAD + HIDDEN_PAD * Nx)
    weight_bytes = sum(int(packed[k].size) * packed[k].dtype.itemsize
                       for k in ("w1", "b1", "w2", "b2", "w3", "b3", "w4", "b4"))
    bytes_accessed = 2 * Bp * Nx * 4 + weight_bytes   # x in + out, weights once
    cost = pl.CostEstimate(flops=int(flops), transcendentals=0,
                           bytes_accessed=int(bytes_accessed))

    out = pl.pallas_call(
        _fcmlp_kernel,
        out_shape=jax.ShapeDtypeStruct((Bp, Nx), x.dtype),
        grid=(nb,),
        in_specs=[
            pl.BlockSpec((tb, Nx), lambda i: (i, 0)),   # x: tiled over batch
            resident(w1), resident(b1),
            resident(w2), resident(b2),
            resident(w3), resident(b3),
            resident(w4), resident(b4),
        ],
        out_specs=pl.BlockSpec((tb, Nx), lambda i: (i, 0)),
        compiler_params=pltpu.CompilerParams(
            dimension_semantics=("parallel",)),          # sharded across v7x's 2 TCs
        cost_estimate=cost,
    )(x, w1, b1, w2, b2, w3, b3, w4, b4)

    return out[:B] if Bp != B else out


def init_fcmlp_params(key, Nx):
    """Logical (unpadded) params mimicking torch.nn.Linear default init
    (U[-1/sqrt(fan_in), 1/sqrt(fan_in)]). Weights stored (in, out); biases (1, out)."""
    dims = [(Nx, HIDDEN), (HIDDEN, HIDDEN), (HIDDEN, HIDDEN), (HIDDEN, Nx - 2)]
    raw = {}
    for i, (fan_in, fan_out) in enumerate(dims, start=1):
        key, kw, kb = jax.random.split(key, 3)
        bound = 1.0 / jnp.sqrt(jnp.float32(fan_in))
        raw[f"w{i}"] = jax.random.uniform(
            kw, (fan_in, fan_out), jnp.float32, -bound, bound)
        raw[f"b{i}"] = jax.random.uniform(
            kb, (1, fan_out), jnp.float32, -bound, bound)
    return raw


def pack_fcmlp_params(raw, Nx):
    """Zero-pad hidden width 100->128, fold F.pad(.,(1,1)) into layer 4, and store
    weights in bf16 (biases stay f32; epilogue runs in f32). Padding is exact:
    added rows/cols are zero and ReLU(0)=0."""
    packed = {}
    for i in (1, 2, 3, 4):
        w, b = raw[f"w{i}"], raw[f"b{i}"]
        in_pad = 0 if i == 1 else HIDDEN_PAD - w.shape[0]
        out_pad = 0 if i == 4 else HIDDEN_PAD - w.shape[1]
        w = jnp.pad(w, ((0, in_pad), (0, out_pad)))
        b = jnp.pad(b, ((0, 0), (0, out_pad)))
        if i == 4:
            # Fold the (1,1) output zero-pad: one zero column on each side.
            w = jnp.pad(w, ((0, 0), (1, 1)))
            b = jnp.pad(b, ((0, 0), (1, 1)))
        packed[f"w{i}"] = w.astype(jnp.bfloat16)
        packed[f"b{i}"] = b.astype(jnp.float32)
    return packed


def fcmlp_reference(x, raw):
    """Pure-JAX f32 reference on the ORIGINAL (unpadded) params, including F.pad."""
    h = x
    for i in (1, 2, 3):
        h = jnp.maximum(h @ raw[f"w{i}"] + raw[f"b{i}"], 0.0)
    y = h @ raw["w4"] + raw["b4"]
    return jnp.pad(y, ((0, 0), (1, 1)))


if __name__ == "__main__":
    Nx = 32
    B = 16
    key = jax.random.PRNGKey(0)
    key, kx = jax.random.split(key)
    x = jax.random.normal(kx, (B, Nx), jnp.float32)

    raw = init_fcmlp_params(key, Nx)
    packed = pack_fcmlp_params(raw, Nx)

    out = jax.block_until_ready(fcmlp_forward(x, packed))

    ref = fcmlp_reference(x, raw)
    assert out.shape == (B, Nx), out.shape
    # bf16 matmul path: compare with a relative-error tolerance (~1e-2 scale).
    rel_err = float(jnp.max(jnp.abs(out - ref)) / (jnp.max(jnp.abs(ref)) + 1e-8))
    assert rel_err < 3e-2, f"relative error too large: {rel_err}"
    print("KERNEL_OK")
</pallas_src>

<mosaic_0001>
module attributes {stable_mosaic.version = 11 : i64} {
  func.func @_fcmlp_kernel(%arg0: i32, %arg1: memref<8x32xf32, #tpu.memory_space<vmem>>, %arg2: memref<32x128xbf16, #tpu.memory_space<vmem>>, %arg3: memref<1x128xf32, #tpu.memory_space<vmem>>, %arg4: memref<128x128xbf16, #tpu.memory_space<vmem>>, %arg5: memref<1x128xf32, #tpu.memory_space<vmem>>, %arg6: memref<128x128xbf16, #tpu.memory_space<vmem>>, %arg7: memref<1x128xf32, #tpu.memory_space<vmem>>, %arg8: memref<128x32xbf16, #tpu.memory_space<vmem>>, %arg9: memref<1x32xf32, #tpu.memory_space<vmem>>, %arg10: memref<8x32xf32, #tpu.memory_space<vmem>>) attributes {dimension_semantics = [#tpu.dimension_semantics<parallel>], iteration_bounds = array<i64: 2>, scalar_prefetch = 0 : i64, scratch_operands = 0 : i64, tpu.core_type = #tpu.core_type<tc>, window_params = [{transform_indices = @transform_0, window_bounds = array<i64: 8, 32>}, {pipeline_mode = #tpu.pipeline_mode<synchronous>, transform_indices = @transform_1, window_bounds = array<i64: 32, 128>}, {pipeline_mode = #tpu.pipeline_mode<synchronous>, transform_indices = @transform_2, window_bounds = array<i64: 1, 128>}, {pipeline_mode = #tpu.pipeline_mode<synchronous>, transform_indices = @transform_3, window_bounds = array<i64: 128, 128>}, {pipeline_mode = #tpu.pipeline_mode<synchronous>, transform_indices = @transform_4, window_bounds = array<i64: 1, 128>}, {pipeline_mode = #tpu.pipeline_mode<synchronous>, transform_indices = @transform_5, window_bounds = array<i64: 128, 128>}, {pipeline_mode = #tpu.pipeline_mode<synchronous>, transform_indices = @transform_6, window_bounds = array<i64: 1, 128>}, {pipeline_mode = #tpu.pipeline_mode<synchronous>, transform_indices = @transform_7, window_bounds = array<i64: 128, 32>}, {pipeline_mode = #tpu.pipeline_mode<synchronous>, transform_indices = @transform_8, window_bounds = array<i64: 1, 32>}, {transform_indices = @transform_9, window_bounds = array<i64: 8, 32>}]} {
    %c0 = arith.constant 0 : index
    %c0_0 = arith.constant 0 : index
    %0 = vector.load %arg1[%c0, %c0_0] : memref<8x32xf32, #tpu.memory_space<vmem>>, vector<8x32xf32>
    %1 = arith.truncf %0 : vector<8x32xf32> to vector<8x32xbf16>
    %c0_1 = arith.constant 0 : index
    %c0_2 = arith.constant 0 : index
    %2 = vector.load %arg2[%c0_1, %c0_2] : memref<32x128xbf16, #tpu.memory_space<vmem>>, vector<32x128xbf16>
    %cst = arith.constant dense<0.000000e+00> : vector<8x128xf32>
    %3 = tpu.matmul %1, %2, %cst {dimension_numbers = #tpu.dot_dimension_numbers<[1], [0], [0], [1], [0, 0, 1, 1], [], []>} : vector<8x32xbf16>, vector<32x128xbf16>, vector<8x128xf32> -> vector<8x128xf32>
    %c0_3 = arith.constant 0 : index
    %c0_4 = arith.constant 0 : index
    %4 = vector.load %arg3[%c0_3, %c0_4] : memref<1x128xf32, #tpu.memory_space<vmem>>, vector<1x128xf32>
    %5 = vector.broadcast %4 : vector<1x128xf32> to vector<8x128xf32>
    %6 = arith.addf %3, %5 : vector<8x128xf32>
    %cst_5 = arith.constant 0.000000e+00 : f32
    %7 = vector.broadcast %cst_5 : f32 to vector<8x128xf32>
    %8 = arith.maximumf %6, %7 : vector<8x128xf32>
    %9 = arith.truncf %8 : vector<8x128xf32> to vector<8x128xbf16>
    %c0_6 = arith.constant 0 : index
    %c0_7 = arith.constant 0 : index
    %10 = vector.load %arg4[%c0_6, %c0_7] : memref<128x128xbf16, #tpu.memory_space<vmem>>, vector<128x128xbf16>
    %cst_8 = arith.constant dense<0.000000e+00> : vector<8x128xf32>
    %11 = tpu.matmul %9, %10, %cst_8 {dimension_numbers = #tpu.dot_dimension_numbers<[1], [0], [0], [1], [0, 0, 1, 1], [], []>} : vector<8x128xbf16>, vector<128x128xbf16>, vector<8x128xf32> -> vector<8x128xf32>
    %c0_9 = arith.constant 0 : index
    %c0_10 = arith.constant 0 : index
    %12 = vector.load %arg5[%c0_9, %c0_10] : memref<1x128xf32, #tpu.memory_space<vmem>>, vector<1x128xf32>
    %13 = vector.broadcast %12 : vector<1x128xf32> to vector<8x128xf32>
    %14 = arith.addf %11, %13 : vector<8x128xf32>
    %cst_11 = arith.constant 0.000000e+00 : f32
    %15 = vector.broadcast %cst_11 : f32 to vector<8x128xf32>
    %16 = arith.maximumf %14, %15 : vector<8x128xf32>
    %17 = arith.truncf %16 : vector<8x128xf32> to vector<8x128xbf16>
    %c0_12 = arith.constant 0 : index
    %c0_13 = arith.constant 0 : index
    %18 = vector.load %arg6[%c0_12, %c0_13] : memref<128x128xbf16, #tpu.memory_space<vmem>>, vector<128x128xbf16>
    %cst_14 = arith.constant dense<0.000000e+00> : vector<8x128xf32>
    %19 = tpu.matmul %17, %18, %cst_14 {dimension_numbers = #tpu.dot_dimension_numbers<[1], [0], [0], [1], [0, 0, 1, 1], [], []>} : vector<8x128xbf16>, vector<128x128xbf16>, vector<8x128xf32> -> vector<8x128xf32>
    %c0_15 = arith.constant 0 : index
    %c0_16 = arith.constant 0 : index
    %20 = vector.load %arg7[%c0_15, %c0_16] : memref<1x128xf32, #tpu.memory_space<vmem>>, vector<1x128xf32>
    %21 = vector.broadcast %20 : vector<1x128xf32> to vector<8x128xf32>
    %22 = arith.addf %19, %21 : vector<8x128xf32>
    %cst_17 = arith.constant 0.000000e+00 : f32
    %23 = vector.broadcast %cst_17 : f32 to vector<8x128xf32>
    %24 = arith.maximumf %22, %23 : vector<8x128xf32>
    %25 = arith.truncf %24 : vector<8x128xf32> to vector<8x128xbf16>
    %c0_18 = arith.constant 0 : index
    %c0_19 = arith.constant 0 : index
    %26 = vector.load %arg8[%c0_18, %c0_19] : memref<128x32xbf16, #tpu.memory_space<vmem>>, vector<128x32xbf16>
    %cst_20 = arith.constant dense<0.000000e+00> : vector<8x32xf32>
    %27 = tpu.matmul %25, %26, %cst_20 {dimension_numbers = #tpu.dot_dimension_numbers<[1], [0], [0], [1], [0, 0, 1, 1], [], []>} : vector<8x128xbf16>, vector<128x32xbf16>, vector<8x32xf32> -> vector<8x32xf32>
    %c0_21 = arith.constant 0 : index
    %c0_22 = arith.constant 0 : index
    %28 = vector.load %arg9[%c0_21, %c0_22] : memref<1x32xf32, #tpu.memory_space<vmem>>, vector<1x32xf32>
    %29 = vector.broadcast %28 : vector<1x32xf32> to vector<8x32xf32>
    %30 = arith.addf %27, %29 : vector<8x32xf32>
    %c0_23 = arith.constant 0 : index
    %c0_24 = arith.constant 0 : index
    %31 = vector.load %arg10[%c0_23, %c0_24] : memref<8x32xf32, #tpu.memory_space<vmem>>, vector<8x32xf32>
    tpu.vector_store %arg10[%c0_23, %c0_24], %30 {strides = array<i32>} : memref<8x32xf32, #tpu.memory_space<vmem>>, vector<8x32xf32>,
    return
  }
  func.func @transform_0(%arg0: i32) -> (i32, i32) {
    %c0_i32 = arith.constant 0 : i32
    %c0_i32_0 = arith.constant 0 : i32
    return %arg0, %c0_i32 : i32, i32
  }
  func.func @transform_1(%arg0: i32) -> (i32, i32) {
    %c0_i32 = arith.constant 0 : i32
    %c0_i32_0 = arith.constant 0 : i32
    %c0_i32_1 = arith.constant 0 : i32
    return %c0_i32, %c0_i32_0 : i32, i32
  }
  func.func @transform_2(%arg0: i32) -> (i32, i32) {
    %c0_i32 = arith.constant 0 : i32
    %c0_i32_0 = arith.constant 0 : i32
    %c0_i32_1 = arith.constant 0 : i32
    return %c0_i32, %c0_i32_0 : i32, i32
  }
  func.func @transform_3(%arg0: i32) -> (i32, i32) {
    %c0_i32 = arith.constant 0 : i32
    %c0_i32_0 = arith.constant 0 : i32
    %c0_i32_1 = arith.constant 0 : i32
    return %c0_i32, %c0_i32_0 : i32, i32
  }
  func.func @transform_4(%arg0: i32) -> (i32, i32) {
    %c0_i32 = arith.constant 0 : i32
    %c0_i32_0 = arith.constant 0 : i32
    %c0_i32_1 = arith.constant 0 : i32
    return %c0_i32, %c0_i32_0 : i32, i32
  }
  func.func @transform_5(%arg0: i32) -> (i32, i32) {
    %c0_i32 = arith.constant 0 : i32
    %c0_i32_0 = arith.constant 0 : i32
    %c0_i32_1 = arith.constant 0 : i32
    return %c0_i32, %c0_i32_0 : i32, i32
  }
  func.func @transform_6(%arg0: i32) -> (i32, i32) {
    %c0_i32 = arith.constant 0 : i32
    %c0_i32_0 = arith.constant 0 : i32
    %c0_i32_1 = arith.constant 0 : i32
    return %c0_i32, %c0_i32_0 : i32, i32
  }
  func.func @transform_7(%arg0: i32) -> (i32, i32) {
    %c0_i32 = arith.constant 0 : i32
    %c0_i32_0 = arith.constant 0 : i32
    %c0_i32_1 = arith.constant 0 : i32
    return %c0_i32, %c0_i32_0 : i32, i32
  }
  func.func @transform_8(%arg0: i32) -> (i32, i32) {
    %c0_i32 = arith.constant 0 : i32
    %c0_i32_0 = arith.constant 0 : i32
    %c0_i32_1 = arith.constant 0 : i32
    return %c0_i32, %c0_i32_0 : i32, i32
  }
  func.func @transform_9(%arg0: i32) -> (i32, i32) {
    %c0_i32 = arith.constant 0 : i32
    %c0_i32_0 = arith.constant 0 : i32
    return %arg0, %c0_i32 : i32, i32
  }
}

</mosaic_0001>

<bundles_post_ra>
// kernel: tpu_custom_call.1
= control target key start
LH: loop header
LB: loop body
LE: loop exit
PB: predicated region body
PF: predicated region fallthrough
CT: control target
= control target key end

     0   :  { %14 = vsyncpa [#allocation3], 0  ;;  %s1549_s0 = inlined_call_operand.vmem [shape: f32[16,32], index: 0, kind: input, shape index: {}]   ;;  %s1550_s1 = inlined_call_operand.hbm [shape: bf16[32,128], index: 1, kind: input, shape index: {}]   ;;  %s1551_s2 = inlined_call_operand.vmem [shape: f32[1,128], index: 2, kind: input, shape index: {}]   ;;  %s1552_s3 = inlined_call_operand.vmem [shape: bf16[128,128], index: 3, kind: input, shape index: {}]   ;;  %s1553_s4 = inlined_call_operand.vmem [shape: f32[1,128], index: 4, kind: input, shape index: {}]   ;;  %s1554_s5 = inlined_call_operand.hbm [shape: bf16[128,128], index: 5, kind: input, shape index: {}]   ;;  %s1555_s6 = inlined_call_operand.vmem [shape: f32[1,128], index: 6, kind: input, shape index: {}]   ;;  %s1556_s7 = inlined_call_operand.vmem [shape: bf16[128,32], index: 7, kind: input, shape index: {}]   ;;  %s1557_s8 = inlined_call_operand.vmem [shape: f32[1,32], index: 8, kind: input, shape index: {}]   ;;  %s1558_s9 = inlined_call_operand.hbm [shape: f32[16,32], index: 9, kind: output, shape index: {}]  }
   0x1   :  { %15 = vsyncpa [#allocation6], 0 }
   0x2   :  { %16 = vsyncpa [#allocation4], 0 }
   0x3   :  { %18 = vsyncpa [#allocation4 + $0x1], 0  ;;  %s1281_s30 = smov 0   ;;  %s1283_s10 = smov 0  }
   0x4   :  { %s1285_s11 = smov 0   ;;  %s1287_s12 = smov 0  }
   0x5 LB: > { %1565 = sst [smem:[#allocation11_spill]] %s1218_s11  ;;  %s1302_s13 = sadd.s32 4294967295, %s1222_s12   ;;  %s1222_s12 = sphi %s1287_s12, %s1579_s12   ;;  %s1218_s11 = sphi %s1285_s11, %s1581_s11   ;;  %s1214_s10 = sphi %s1283_s10, %s1583_s10   ;;  %s1210_s30 = sphi %s1281_s30, %s1582_s30  }
   0x6   : > { %s863_s14 = sadd.s32 4294967294, %s1222_s12   ;;  %s1306_s15 = sadd.s32 1, %s1222_s12  }
   0x7   : > { %1566 = sst [smem:[#allocation12_spill]] %s1306_s15  ;;  %s225_s16 = sadd.s32 1, %s1218_s11 }
   0x8   : > { %s222_s17 = ssub.s32 %s1222_s12, %s1306_s15  ;;  %p235_p0 = scmp.ne.s32.totalorder %s1218_s11, %s1214_s10 }
   0x9   : > { %p223_p1 = scmp.eq.s32.totalorder %s222_s17, 0  ;;  %p236_p2 = scmp.eq.s32.totalorder %s1302_s13, 1 }
   0xa   : > { %p241_p3 = scmp.ne.s32.totalorder %s1214_s10, %s1210_s30  ;;  %p242_p4 = scmp.eq.s32.totalorder %s863_s14, 1 }
   0xb   : > { %s1317_s18 = scalar_select %p223_p1, %s1218_s11, %s225_s16  }
   0xc   : > { %p1319_p5 = por %p236_p2, %p235_p0  ;;  %p1323_p6 = por %p242_p4, %p241_p3 }
   0xd   : > { %1567 = sst [smem:[#allocation13_spill]] %s1317_s18  ;;  %p864_p7 = scmp.ge.s32.totalorder %s1222_s12, 1 }
   0xe   : > { %s1568_s19 = scalar_select %p1319_p5, 1, 0 }
   0xf   : > { %s1569_s20 = scalar_select %p1323_p6, 1, 0 }
  0x10   : > { %p249_p8 = scmp.lt.s32.totalorder %s1222_s12, 3  ;;  %p1559_p9 = scmp.eq.s32.totalorder %s1302_s13, 0 }
  0x11   : > { %s1224_s22 = smov [#allocation2]   ;;  %s1225_s25 = smov [#allocation5]  }
  0x12   : > { %p1330_p10 = pnand %p864_p7, %p249_p8  ;;  %s261_s23 = sshll.u32 %s1224_s22, 4  ;;  %s262_s23 = int_to_ptr.vmem [resolvable:$true] %s261_s23 }
  0x13   : > { %s283_s26 = sshll.u32 %s1225_s25, 4  ;;  %s1096_s29 = scalar_lea.hbm %s1550_s1, 256  ;;  %s1342_s26 = int_to_ptr.vmem [resolvable:$true] %s283_s26 }
  0x14   : > { %s1570_s21 = scalar_select %p1330_p10, 1, 0 }
  0x15   : > { %p1016_p11 = pneg %p1330_p10  ;;  %p1097_p13 = scmp.ne.s32.totalorder %s1550_s1, %s1096_s29 }
  0x16   : > { %p1103_p3 = scmp.lt.u32.totalorder %s1096_s29, %s1550_s1 }
  0x17   : > { %p1338_p12 = pnand %p1559_p9, %p1016_p11 }
  0x19   : > { %p1098_p0 = pneg %p1338_p12 }
  0x1b   : > { %p1099_p1 = pnand %p1098_p0, %p1097_p13 }
  0x1d   : > { %p1100_p2 = pneg %p1099_p1 }
  0x1f   : > { %p1105_p4 = pnand %p1103_p3, %p1100_p2 }
  0x21   : > { %1108 = shalt.err (!%p1105_p4)
}
  0x22   : > { %s1109_s25 = scalar_lea.vmem %s262_s23, 256  ;;  %p1117_p9 = scmp.lt.s32.totalorder %s262_s23, %s262_s23 }
  0x23   : > { %p1110_p7 = scmp.ne.s32.totalorder %s262_s23, %s1109_s25  ;;  %p1118_p6 = scmp.lt.s32.totalorder %s1109_s25, %s1109_s25 }
  0x25   : > { %p1112_p8 = pnand %p1110_p7, %p1098_p0  ;;  %p1119_p5 = por %p1118_p6, %p1117_p9 }
  0x27   : > { %p1113_p11 = pneg %p1112_p8 }
  0x29   : > { %p1120_p10 = pnand %p1119_p5, %p1113_p11 }
  0x2b   : > { %1123 = shalt.err (!%p1120_p10)
}
  0x2c   : > { %s1226_s27 = smov 64   ;;  %s1227_s28 = smov 4  }
  0x2d   : > { %1019 = dma.hbm_to_vmem [thread:$0]  (!%p1338_p12), %s1550_s1, 256, %s262_s23, [#allocation3], %s1226_s27, %s1226_s27, %s1227_s28  }
  0x2e   : > { %s1124_s22 = scalar_lea.hbm %s1554_s5, 1024 }
  0x2f   : > { %p1125_p13 = scmp.ne.s32.totalorder %s1554_s5, %s1124_s22  ;;  %p1131_p9 = scmp.lt.u32.totalorder %s1124_s22, %s1554_s5 }
  0x31   : > { %p1127_p5 = pnand %p1125_p13, %p1098_p0 }
  0x33   : > { %p1128_p6 = pneg %p1127_p5 }
  0x35   : > { %p1133_p10 = pnand %p1131_p9, %p1128_p6 }
  0x37   : > { %1136 = shalt.err (!%p1133_p10)
}
  0x38   : > { %s1137_s23 = scalar_lea.vmem %s1342_s26, 1024  ;;  %p1145_p4 = scmp.lt.s32.totalorder %s1342_s26, %s1342_s26 }
  0x39   : > { %p1138_p1 = scmp.ne.s32.totalorder %s1342_s26, %s1137_s23  ;;  %p1146_p7 = scmp.lt.s32.totalorder %s1137_s23, %s1137_s23 }
  0x3b   : > { %p1140_p2 = pnand %p1138_p1, %p1098_p0  ;;  %p1147_p8 = por %p1146_p7, %p1145_p4 }
  0x3d   : > { %p1141_p3 = pneg %p1140_p2 }
  0x3f   : > { %p1148_p11 = pnand %p1147_p8, %p1141_p3 }
  0x41   : > { %1151 = shalt.err (!%p1148_p11)
}
  0x42   : > { %1022 = dma.hbm_to_vmem [thread:$0]  (!%p1338_p12), %s1554_s5, 1024, %s1342_s26, [#allocation6], %s1226_s27, %s1226_s27, %s1227_s28  }
  0x43   : > { %p1572_p13 = scmp.ne.s32.totalorder %s1570_s21, 0 }
  0x44   : > { %p1573_p5 = scmp.eq.s32.totalorder (!%p1572_p13), %s1302_s13, 0 }
  0x45   : > { %315 = sbr.rel (%p1572_p13) target bundleno = 973 (0x3cd), region = 56 }
  0x4c   : > { %1197 = dma.done.wait (%p1573_p5), [#allocation3], 256   ;;  %p1574_p0 = pmov %p1573_p5 }
  0x4e   : > { %1199 = vsyncadd (%p1574_p0), [#allocation3], 4294967040  ;;  %p1575_p6 = pmov %p1574_p0 }
  0x4f   : > { %p1576_p9 = pmov %p1574_p0 }
  0x50   : > { %1201 = dma.done.wait (%p1575_p6), [#allocation6], 1024  }
  0x51   : > { %1203 = vsyncadd (%p1576_p9), [#allocation6], 4294966272  ;;  %p354_p10 = scmp.lt.s32.totalorder %s1302_s13, 1  ;;  %v1228_v0 = vmov 0.0   ;;  %vm1229_vm0 = vmmov 0   ;;  %v1070_v1 = vld [vmem:[#allocation2] sm:$0xff]  }
  0x52   : > { %938 = vmatprep.subr.bf16.mxu0 %v1228_v0  ;;  %942 = vmatprep.mubr.msk.bf16.mxu0 %vm1229_vm0, %v1228_v0  ;;  %v1071_v2 = vld [vmem:[#allocation2 + $0x8] sm:$0xff]   ;;  %v1072_v4 = vld [vmem:[%s1552_s3] sm:$0xff]   ;;  %vm384_vm1 = vcmask 261120   ;;  %v1074_v7 = vld [vmem:[%s1552_s3 + $0x10] sm:$0xff]   ;;  %s351_s11 = sand.u32 1, %s1214_s10   ;;  %s905_s24 = sshll.u32 %s1302_s13, 7 }
  0x53   : > { %s355_s18 = scalar_select %p354_p10, %s1302_s13, 1  ;;  %946 = vmatprep.subr.bf16.mxu1 %v1228_v0  ;;  %962 = vmatprep.mubr.msk.bf16.mxu1 %vm1229_vm0, %v1228_v0  ;;  %v1073_v6 = vld [vmem:[%s1552_s3 + $0x8] sm:$0xff]   ;;  %v1075_v8 = vld [vmem:[%s1552_s3 + $0x18] sm:$0xff]   ;;  %v1076_v9 = vld [vmem:[%s1552_s3 + $0x20] sm:$0xff]  }
  0x54   : > { %939 = vmatpush3.bf16.msra.mxu0 %v1070_v1  ;;  %947 = vmatpush3.bf16.msra.mxu1 %v1072_v4  ;;  %v1077_v10 = vld [vmem:[%s1552_s3 + $0x28] sm:$0xff]   ;;  %v1078_v11 = vld [vmem:[%s1552_s3 + $0x30] sm:$0xff]   ;;  %v1079_v12 = vld [vmem:[%s1552_s3 + $0x38] sm:$0xff]   ;;  %s871_s15 = sshll.u32 %s351_s11, 3  ;;  %s1506_s14 = scalar_lea.hbm %s1558_s9, %s905_s24 }
  0x55   : > { %s872_s21 = sshll.u32 %s355_s18, 3  ;;  %940 = vmatprep.subr.bf16.mxu0 %v1228_v0  ;;  %948 = vmatprep.subr.bf16.mxu1 %v1228_v0  ;;  %v1080_v13 = vld [vmem:[#allocation5] sm:$0xff]   ;;  %v1081_v14 = vld [vmem:[#allocation5 + $0x8] sm:$0xff]   ;;  %v1082_v15 = vld [vmem:[#allocation5 + $0x10] sm:$0xff]   ;;  %s353_s26 = scalar_lea.vmem [#allocation7], %s871_s15 }
  0x56   : > { %s357_s27 = scalar_lea.vmem %s1549_s0, %s872_s21  ;;  %v1083_v16 = vld [vmem:[#allocation5 + $0x18] sm:$0xff]   ;;  %v1084_v17 = vld [vmem:[#allocation5 + $0x20] sm:$0xff]   ;;  %v1085_v18 = vld [vmem:[#allocation5 + $0x28] sm:$0xff]   ;;  %s769_s13 = scalar_lea.sflag [#allocation4], %s351_s11 }
  0x57   : > { %v359_v3 = vld [vmem:[%s357_s27] sm:$0xff]  ;;  %v1087_v28 = vld [vmem:[#allocation5 + $0x38] sm:$0xff]   ;;  %v1090_v31 = vld [vmem:[%s1556_s7 + $0x10] sm:$0xff]   ;;  %s782_s27 = sshll.u32 %s353_s26, 4  ;;  %p1577_p1 = scmp.ne.s32.totalorder %s1568_s19, 0  ;;  %s1508_s27 = int_to_ptr.vmem [resolvable:$true] %s782_s27 }
  0x58   : > { %v360_v5 = vpack.c.bf16 %v359_v3, %v359_v3  ;;  %941 = vmatpush3.bf16.msra.mxu0 %v1071_v2  ;;  %949 = vmatpush3.bf16.msra.mxu1 %v1073_v6  ;;  %v873_v19 = vld [vmem:[%s1551_s2] ss:$0 sm:$0xff]  ;;  %v1089_v30 = vld [vmem:[%s1556_s7 + $0x8] sm:$0xff]   ;;  %v1091_v32 = vld [vmem:[%s1556_s7 + $0x18] sm:$0xff]   ;;  %s1152_s16 = scalar_lea.vmem %s1508_s27, 128  ;;  %s1230_s17 = smov [#allocation7]  }
  0x59   : > { %966 = vmatprep.subr.bf16.mxu0 %v1228_v0  ;;  %950 = vmatprep.subr.bf16.mxu1 %v1228_v0  ;;  %v1086_v27 = vld [vmem:[#allocation5 + $0x30] sm:$0xff]   ;;  %v1093_v34 = vld [vmem:[%s1556_s7 + $0x28] sm:$0xff]   ;;  %v1094_v43 = vld [vmem:[%s1556_s7 + $0x30] sm:$0xff]   ;;  %p1153_p12 = scmp.ne.s32.totalorder %s1508_s27, %s1152_s16  ;;  %s1156_s22 = sshll.u32 %s1230_s17, 4  ;;  %s1157_s22 = int_to_ptr.vmem [resolvable:$false] %s1156_s22 }
  0x5a   : > { %v1088_v29 = vld [vmem:[%s1556_s7] sm:$0xff]   ;;  %v1095_v44 = vld [vmem:[%s1556_s7 + $0x38] sm:$0xff]   ;;  %s1158_s25 = scalar_lea.vmem %s1157_s22, 256  ;;  %p1159_p4 = scmp.lt.s32.totalorder %s1508_s27, %s1157_s22 }
  0x5b   : > { %943 = vmatmul.mubr.msk.bf16.vlgmr.msra.gmra.mrb[0].mxu0 %vm384_vm1, %v360_v5  ;;  %v1092_v33 = vld [vmem:[%s1556_s7 + $0x20] sm:$0xff]   ;;  %p1154_p2 = pnand %p1153_p12, %p1577_p1  ;;  %p1160_p7 = scmp.lt.s32.totalorder %s1158_s25, %s1152_s16 }
  0x5c   : > { %982 = vmatprep.mubr.msk.bf16.mxu0 %vm1229_vm0, %v1228_v0  ;;  %951 = vmatpush3.bf16.msra.mxu1 %v1074_v7  ;;  %v877_v35 = vld [vmem:[%s1553_s4] ss:$0 sm:$0xff] }
  0x5d   : > { %952 = vmatprep.subr.bf16.mxu1 %v1228_v0  ;;  %967 = vmatpush3.bf16.msra.mxu0 %v1080_v13  ;;  %v886_v45 = vld [vmem:[%s1555_s6] ss:$0 sm:$0xff]  ;;  %p1155_p3 = pneg %p1154_p2  ;;  %p1161_p8 = por %p1160_p7, %p1159_p4 }
  0x5e   : > { %968 = vmatprep.subr.bf16.mxu0 %v1228_v0  ;;  %v895_v53 = vld [vmem:[%s1557_s8] ss:$0 sm:$0xff] }
  0x5f   : > { %p1162_p11 = pnand %p1161_p8, %p1155_p3 }
  0x60   : > { %953 = vmatpush3.bf16.msra.mxu1 %v1075_v8 }
  0x61   : > { %954 = vmatprep.subr.bf16.mxu1 %v1228_v0  ;;  %969 = vmatpush3.bf16.msra.mxu0 %v1081_v14 }
  0x62   : > { %970 = vmatprep.subr.bf16.mxu0 %v1228_v0 }
  0x64   : > { %955 = vmatpush3.bf16.msra.mxu1 %v1076_v9 }
  0x65   : > { %956 = vmatprep.subr.bf16.mxu1 %v1228_v0  ;;  %971 = vmatpush3.bf16.msra.mxu0 %v1082_v15 }
  0x66   : > { %972 = vmatprep.subr.bf16.mxu0 %v1228_v0 }
  0x68   : > { %957 = vmatpush3.bf16.msra.mxu1 %v1077_v10 }
  0x69   : > { %958 = vmatprep.subr.bf16.mxu1 %v1228_v0  ;;  %973 = vmatpush3.bf16.msra.mxu0 %v1083_v16 }
  0x6a   : > { %974 = vmatprep.subr.bf16.mxu0 %v1228_v0 }
  0x6c   : > { %959 = vmatpush3.bf16.msra.mxu1 %v1078_v11 }
  0x6d   : > { %960 = vmatprep.subr.bf16.mxu1 %v1228_v0  ;;  %975 = vmatpush3.bf16.msra.mxu0 %v1084_v17 }
  0x6e   : > { %976 = vmatprep.subr.bf16.mxu0 %v1228_v0 }
  0x70   : > { %961 = vmatpush3.bf16.msra.mxu1 %v1079_v12 }
  0x71   : > { %986 = vmatprep.subr.bf16.mxu1 %v1228_v0  ;;  %977 = vmatpush3.bf16.msra.mxu0 %v1085_v18 }
  0x72   : > { %978 = vmatprep.subr.bf16.mxu0 %v1228_v0 }
  0x75   : > { %979 = vmatpush3.bf16.msra.mxu0 %v1086_v27 }
  0x76   : > { %980 = vmatprep.subr.bf16.mxu0 %v1228_v0 }
  0x79   : > { %981 = vmatpush3.bf16.msra.mxu0 %v1087_v28 }
 0x12e   : > { %v422_v20 = vpop.f32.mrb[0].mxu0 }
 0x12f   : > { %v423_v21 = vadd.f32 %v873_v19, %v422_v20  ;;  %v944_v22 = vpop.f32.mrb[1].mxu0 }
 0x130   : > { %v425_v23 = vpop.f32.mrb[2].mxu0 }
 0x131   : > { %v428_v24 = vmax.f32 %v423_v21, 0.0  ;;  %v945_v25 = vpop.f32.mrb[3].mxu0 }
 0x133   : > { %v429_v26 = vpack.c.bf16 %v428_v24, %v428_v24 }
 0x135   : > { %963 = vmatmul.mubr.bf16.vlgmr.msra.gmra.mrb[0].mxu1 %v429_v26 }
 0x136   : > { %1002 = vmatprep.mubr.msk.bf16.mxu1 %vm1229_vm0, %v1228_v0  ;;  %987 = vmatpush3.bf16.msra.mxu1 %v1088_v29 }
 0x137   : > { %988 = vmatprep.subr.bf16.mxu1 %v1228_v0 }
 0x13a   : > { %989 = vmatpush3.bf16.msra.mxu1 %v1089_v30 }
 0x13b   : > { %990 = vmatprep.subr.bf16.mxu1 %v1228_v0 }
 0x13e   : > { %991 = vmatpush3.bf16.msra.mxu1 %v1090_v31 }
 0x13f   : > { %992 = vmatprep.subr.bf16.mxu1 %v1228_v0 }
 0x142   : > { %993 = vmatpush3.bf16.msra.mxu1 %v1091_v32 }
 0x143   : > { %994 = vmatprep.subr.bf16.mxu1 %v1228_v0 }
 0x146   : > { %995 = vmatpush3.bf16.msra.mxu1 %v1092_v33 }
 0x147   : > { %996 = vmatprep.subr.bf16.mxu1 %v1228_v0 }
 0x14a   : > { %997 = vmatpush3.bf16.msra.mxu1 %v1093_v34 }
 0x14b   : > { %998 = vmatprep.subr.bf16.mxu1 %v1228_v0 }
 0x14e   : > { %999 = vmatpush3.bf16.msra.mxu1 %v1094_v43 }
 0x14f   : > { %1000 = vmatprep.subr.bf16.mxu1 %v1228_v0 }
 0x152   : > { %1001 = vmatpush3.bf16.msra.mxu1 %v1095_v44 }
 0x208   : > { %v535_v36 = vpop.f32.mrb[0].mxu1 }
 0x209   : > { %v536_v37 = vadd.f32 %v877_v35, %v535_v36  ;;  %v964_v38 = vpop.f32.mrb[1].mxu1 }
 0x20a   : > { %v538_v39 = vpop.f32.mrb[2].mxu1 }
 0x20b   : > { %v541_v40 = vmax.f32 %v536_v37, 0.0  ;;  %v965_v41 = vpop.f32.mrb[3].mxu1 }
 0x20d   : > { %v542_v42 = vpack.c.bf16 %v541_v40, %v541_v40 }
 0x20f   : > { %983 = vmatmul.mubr.bf16.vlgmr.msra.gmra.mrb[4].mxu0 %v542_v42 }
 0x2e2   : > { %v648_v46 = vpop.f32.mrb[4].mxu0 }
 0x2e3   : > { %v649_v47 = vadd.f32 %v886_v45, %v648_v46  ;;  %v984_v48 = vpop.f32.mrb[5].mxu0 }
 0x2e4   : > { %v651_v49 = vpop.f32.mrb[6].mxu0 }
 0x2e5   : > { %v654_v50 = vmax.f32 %v649_v47, 0.0  ;;  %v985_v51 = vpop.f32.mrb[7].mxu0 }
 0x2e7   : > { %v655_v52 = vpack.c.bf16 %v654_v50, %v654_v50 }
 0x2e9   : > { %1003 = vmatmul.mubr.bf16.vlgmr.msra.gmra.mrb[4].mxu1 %v655_v52 }
 0x3bc   : > { %v761_v54 = vpop.f32.mrb[4].mxu1 }
 0x3bd   : > { %v762_v55 = vadd.f32 %v895_v53, %v761_v54  ;;  %v1004_v56 = vpop.f32.mrb[5].mxu1 }
 0x3be   : > { %v764_v57 = vpop.f32.mrb[6].mxu1 }
 0x3bf   : > { %v1005_v58 = vpop.f32.mrb[7].mxu1  ;;  %767 = vst.msk [vmem:[%s353_s26] sm:$0xff] %vm384_vm1, %v762_v55 }
 0x3c0   : > { %1165 = shalt.err (!%p1162_p11)
}
 0x3c1   : > { %s1166_s23 = scalar_lea.hbm %s1506_s14, 128  ;;  %s1170_s18 = scalar_lea.hbm %s1558_s9, 256 }
 0x3c2   : > { %p1167_p13 = scmp.ne.s32.totalorder %s1506_s14, %s1166_s23  ;;  %p1171_p6 = scmp.lt.u32.totalorder %s1506_s14, %s1558_s9 }
 0x3c3   : > { %p1172_p9 = scmp.lt.u32.totalorder %s1170_s18, %s1166_s23  ;;  %p1174_p12 = scmp.lt.u32.totalorder %s1166_s23, %s1506_s14 }
 0x3c4   : > { %p1168_p5 = pnand %p1167_p13, %p1577_p1 }
 0x3c5   : > { %p1173_p10 = por %p1172_p9, %p1171_p6 }
 0x3c6   : > { %p1169_p0 = pneg %p1168_p5 }
 0x3c7   : > { %p1175_p2 = por %p1174_p12, %p1173_p10 }
 0x3c9   : > { %p1176_p3 = pnand %p1175_p2, %p1169_p0 }
 0x3cb   : > { %1179 = shalt.err (!%p1176_p3)
}
 0x3cc   : > { %1014 = dma.vmem_to_hbm [thread:$0]  (%p1577_p1), %s1508_s27, 128, %s1506_s14, %s769_s13  }
 0x3cd PF: > { %p1031_p4 = scmp.ge.s32.totalorder %s1222_s12, 2  ;;  %s794_s26 = sand.u32 1, %s1210_s30  }
 0x3ce   : > { %p1578_p7 = scmp.ne.s32.totalorder %s1569_s20, 0  ;;  %s795_s28 = scalar_lea.sflag [#allocation4], %s794_s26 }
 0x3d0   : > { %p1024_p8 = pnand %p1031_p4, %p1578_p7 }
 0x3d2   : > { %1205 = dma.done.wait (!%p1024_p8), %s795_s28, 128  }
 0x3d3   : > { %1207 = vsyncadd (!%p1024_p8), %s795_s28, 4294967168  ;;  %s1579_s12 = sld [smem:[#allocation12_spill]]  ;;  %s1580_s29 = sld [smem:[#allocation11_spill]] }
 0x3d4   : > { %s1581_s11 = sld [smem:[#allocation13_spill]]  ;;  %s1582_s30 = smov %s1214_s10 }
 0x3d9   : > { %p21_p11 = scmp.ge.s32.totalorder %s1579_s12, 4   ;;  %s1583_s10 = smov %s1580_s29 }
 0x3db   :  { %23 = sbr.rel (!%p21_p11) target bundleno = 5 (0x5), region = 100 }
 0x3e2   :  { %800 = vsyncpa [#allocation3], 1 }
 0x3e3   :  { %802 = vsyncpa [#allocation3 + $0x1], 1 }
 0x3e4   :  { %803 = vsyncpa [#allocation6], 1 }
 0x3e5   :  { %804 = vsyncpa [#allocation4], 1 }
 0x3e6   :  { %806 = vsyncpa [#allocation4 + $0x1], 1 }

</bundles_post_ra>
